<compile_context>
chip_gen: v6e
topology: v6e:2x2x1
jax: 0.10.0
libtpu: 0.0.40
codegen_flags: <defaults>
</compile_context>

<pallas_src>
import functools

import jax
import jax.numpy as jnp
from jax.experimental import pallas as pl
from jax.experimental.pallas import tpu as pltpu

# Tile-aligned margins inside the padded VMEM scratch: the image interior is
# stored at (row=PAD_R, col=PAD_C) so the store is sublane/lane aligned and the
# single-pixel zero border lives at rows/cols PAD_R-1 / PAD_C-1 and at the tail.
PAD_R = 8     # sublane-aligned top margin (>= 1)
PAD_C = 128   # lane-aligned left margin   (>= 1)


def _gdl_kernel(x_ref, y_ref, out_ref, bufx_ref, bufy_ref, acc_ref, *,
                H, W, inv_scale):
    i = pl.program_id(1)
    n_inner = pl.num_programs(1)

    @pl.when(i == 0)
    def _init():
        # Zero the accumulator and the padded scratch buffers.  Zeroing the
        # scratch establishes the conv zero border; the interior is overwritten
        # every step so the border stays zero for the whole inner loop.
        acc_ref[...] = jnp.zeros_like(acc_ref)
        bufx_ref[...] = jnp.zeros_like(bufx_ref)
        bufy_ref[...] = jnp.zeros_like(bufy_ref)

    def sobel_mag(src_ref, buf_ref):
        # Store the raw-dtype block into the f32 zero-bordered scratch at a
        # tile-aligned offset (cast happens on VMEM-resident data).
        buf_ref[:, PAD_R:PAD_R + H, PAD_C:PAD_C + W] = (
            src_ref[...].astype(jnp.float32))

        # Separable Sobel (cross-correlation, zero padding = 1), matching
        # F.conv2d with kx = [1,2,1]^T x [-1,0,1] and ky = [-1,0,1]^T x [1,2,1].
        # Horizontal difference on H+2 padded rows, then 3 sublane taps:
        dw = (buf_ref[:, PAD_R - 1:PAD_R + 1 + H, PAD_C + 1:PAD_C + 1 + W]
              - buf_ref[:, PAD_R - 1:PAD_R + 1 + H, PAD_C - 1:PAD_C - 1 + W])
        gx = dw[:, 0:H, :] + 2.0 * dw[:, 1:1 + H, :] + dw[:, 2:2 + H, :]
        # Vertical difference on W+2 padded cols, then 3 lane taps:
        dh = (buf_ref[:, PAD_R + 1:PAD_R + 1 + H, PAD_C - 1:PAD_C + 1 + W]
              - buf_ref[:, PAD_R - 1:PAD_R - 1 + H, PAD_C - 1:PAD_C + 1 + W])
        gy = dh[:, :, 0:W] + 2.0 * dh[:, :, 1:1 + W] + dh[:, :, 2:2 + W]
        return jnp.sqrt(gx * gx + gy * gy)

    diff = jnp.abs(sobel_mag(x_ref, bufx_ref) - sobel_mag(y_ref, bufy_ref))
    # Leading-axis reduce only (pure VALU adds); keep (H, W) partials in f32.
    acc_ref[...] += jnp.sum(diff, axis=0)

    @pl.when(i == n_inner - 1)
    def _finalize():
        # Single cross-lane reduce per grid slice; scalar broadcast into a
        # lane-dense output block.
        total = jnp.sum(acc_ref[...]) * inv_scale
        out_ref[...] = jnp.full(out_ref.shape, total, dtype=jnp.float32)


def gradient_difference_loss(inp, tgt, scale=1.0, reduction="mean",
                             tile_budget_bytes=1 << 20):
    """Pallas TPU implementation of GradientDifferenceLoss.forward.

    inp, tgt: (B, C, H, W) with C == 1 (required by the reference (1,1,3,3)
    conv weight).  Returns a float32 scalar for reduction in {'mean', 'sum'}.
    """
    assert reduction in ("mean", "sum"), "reduction 'none' not implemented"
    assert inp.shape == tgt.shape
    B, C, H, W = inp.shape
    assert C == 1, "reference module's (1,1,3,3) conv weight requires C == 1"
    N = B * C

    x = inp.reshape(N, H, W)   # keep original dtype; cast happens in-kernel
    y = tgt.reshape(N, H, W)

    # Megacore split over the batch axis (helps v7x's 2 TCs; harmless on 1-TC).
    G = 2 if (N % 2 == 0 and N >= 2) else 1
    n_per_g = N // G

    # Images per grid step: largest divisor of n_per_g under the tile budget,
    # so double-buffered input tiles stay small on every generation's VMEM.
    itemsize = jnp.dtype(x.dtype).itemsize
    per_img_bytes = H * W * itemsize
    NB = 1
    for d in range(1, n_per_g + 1):
        if n_per_g % d == 0 and d * per_img_bytes <= tile_budget_bytes:
            NB = d
    n_inner = n_per_g // NB

    inv_count = 1.0 / float(N * H * W) if reduction == "mean" else 1.0
    kernel = functools.partial(
        _gdl_kernel, H=H, W=W, inv_scale=float(scale) * inv_count)

    in_spec_x = pl.BlockSpec((NB, H, W), lambda g, i: (g * n_inner + i, 0, 0))
    in_spec_y = pl.BlockSpec((NB, H, W), lambda g, i: (g * n_inner + i, 0, 0))
    pad_shape = (NB, H + PAD_R + 1, W + PAD_C + 1)

    out = pl.pallas_call(
        kernel,
        out_shape=jax.ShapeDtypeStruct((G, 8, 128), jnp.float32),
        grid_spec=pltpu.PrefetchScalarGridSpec(
            num_scalar_prefetch=0,
            grid=(G, n_inner),
            in_specs=[in_spec_x, in_spec_y],
            out_specs=pl.BlockSpec((1, 8, 128), lambda g, i: (g, 0, 0)),
            scratch_shapes=[
                pltpu.VMEM(pad_shape, jnp.float32),   # padded x block
                pltpu.VMEM(pad_shape, jnp.float32),   # padded y block
                pltpu.VMEM((H, W), jnp.float32),      # partial-sum accumulator
            ],
        ),
        compiler_params=pltpu.CompilerParams(
            dimension_semantics=("parallel", "arbitrary"),
            vmem_limit_bytes=32 * 1024 * 1024,
        ),
    )(x, y)

    # One partial (scaled) sum per parallel slice; combine in the wrapper.
    return jnp.sum(out[:, 0, 0])


def _reference_jax(inp, tgt, scale=1.0):
    """Pure-JAX reference (mirrors the PyTorch module) for a sanity check."""
    kx = jnp.array([[-1, 0, 1], [-2, 0, 2], [-1, 0, 1]], jnp.float32)
    ky = jnp.array([[-1, -2, -1], [0, 0, 0], [1, 2, 1]], jnp.float32)

    def grads(t):
        t = t.astype(jnp.float32)
        w = lambda k: k.reshape(1, 1, 3, 3)
        conv = lambda k: jax.lax.conv_general_dilated(
            t, w(k), window_strides=(1, 1), padding=((1, 1), (1, 1)),
            dimension_numbers=("NCHW", "OIHW", "NCHW"))
        gx, gy = conv(kx), conv(ky)
        return jnp.sqrt(gx * gx + gy * gy)

    return jnp.mean(jnp.abs(grads(inp) - grads(tgt))) * scale


if __name__ == "__main__":
    key = jax.random.PRNGKey(0)
    k1, k2 = jax.random.split(key)
    B, C, H, W = 2, 1, 16, 16  # C must be 1 (see layout comment)
    x = jax.random.normal(k1, (B, C, H, W), dtype=jnp.float32)
    y = jax.random.normal(k2, (B, C, H, W), dtype=jnp.float32)

    loss = gradient_difference_loss(x, y, scale=1.0, reduction="mean")
    loss = jax.block_until_ready(loss)

    ref = jax.block_until_ready(_reference_jax(x, y, scale=1.0))
    assert jnp.allclose(loss, ref, rtol=1e-5, atol=1e-5), (loss, ref)

    print("KERNEL_OK")
</pallas_src>

<mosaic_0001>
module attributes {stable_mosaic.version = 11 : i64} {
  func.func @_gdl_kernel(%arg0: i32, %arg1: i32, %arg2: memref<1x16x16xf32, #tpu.memory_space<vmem>>, %arg3: memref<1x16x16xf32, #tpu.memory_space<vmem>>, %arg4: memref<1x8x128xf32, #tpu.memory_space<vmem>>, %arg5: memref<1x25x145xf32, #tpu.memory_space<vmem>>, %arg6: memref<1x25x145xf32, #tpu.memory_space<vmem>>, %arg7: memref<16x16xf32, #tpu.memory_space<vmem>>) attributes {dimension_semantics = [#tpu.dimension_semantics<parallel>, #tpu.dimension_semantics<arbitrary>], iteration_bounds = array<i64: 2, 1>, scalar_prefetch = 0 : i64, scratch_operands = 3 : i64, tpu.core_type = #tpu.core_type<tc>, window_params = [{transform_indices = @transform_0, window_bounds = array<i64: 1, 16, 16>}, {transform_indices = @transform_1, window_bounds = array<i64: 1, 16, 16>}, {transform_indices = @transform_2, window_bounds = array<i64: 1, 8, 128>}]} {
    %c0_i32 = arith.constant 0 : i32
    %0 = arith.cmpi eq, %arg1, %c0_i32 : i32
    %1 = arith.extui %0 : i1 to i32
    %c0_i32_0 = arith.constant 0 : i32
    %2 = arith.cmpi ne, %1, %c0_i32_0 : i32
    scf.if %2 {
      %cst_40 = arith.constant 0.000000e+00 : f32
      %64 = vector.broadcast %cst_40 : f32 to vector<16x16xf32>
      %c0_41 = arith.constant 0 : index
      %c0_42 = arith.constant 0 : index
      %65 = vector.load %arg7[%c0_41, %c0_42] : memref<16x16xf32, #tpu.memory_space<vmem>>, vector<16x16xf32>
      tpu.vector_store %arg7[%c0_41, %c0_42], %64 {strides = array<i32>} : memref<16x16xf32, #tpu.memory_space<vmem>>, vector<16x16xf32>,
      %cst_43 = arith.constant 0.000000e+00 : f32
      %66 = vector.broadcast %cst_43 : f32 to vector<1x25x145xf32>
      %c0_44 = arith.constant 0 : index
      %c0_45 = arith.constant 0 : index
      %c0_46 = arith.constant 0 : index
      %67 = vector.load %arg5[%c0_44, %c0_45, %c0_46] : memref<1x25x145xf32, #tpu.memory_space<vmem>>, vector<1x25x145xf32>
      tpu.vector_store %arg5[%c0_44, %c0_45, %c0_46], %66 {strides = array<i32>} : memref<1x25x145xf32, #tpu.memory_space<vmem>>, vector<1x25x145xf32>,
      %cst_47 = arith.constant 0.000000e+00 : f32
      %68 = vector.broadcast %cst_47 : f32 to vector<1x25x145xf32>
      %c0_48 = arith.constant 0 : index
      %c0_49 = arith.constant 0 : index
      %c0_50 = arith.constant 0 : index
      %69 = vector.load %arg6[%c0_48, %c0_49, %c0_50] : memref<1x25x145xf32, #tpu.memory_space<vmem>>, vector<1x25x145xf32>
      tpu.vector_store %arg6[%c0_48, %c0_49, %c0_50], %68 {strides = array<i32>} : memref<1x25x145xf32, #tpu.memory_space<vmem>>, vector<1x25x145xf32>,
    } else {
    }
    %c0 = arith.constant 0 : index
    %c0_1 = arith.constant 0 : index
    %c0_2 = arith.constant 0 : index
    %3 = vector.load %arg2[%c0, %c0_1, %c0_2] : memref<1x16x16xf32, #tpu.memory_space<vmem>>, vector<1x16x16xf32>
    %c0_3 = arith.constant 0 : index
    %c8 = arith.constant 8 : index
    %c128 = arith.constant 128 : index
    %4 = vector.load %arg5[%c0_3, %c8, %c128] : memref<1x25x145xf32, #tpu.memory_space<vmem>>, vector<1x16x16xf32>
    tpu.vector_store %arg5[%c0_3, %c8, %c128], %3 {strides = array<i32>} : memref<1x25x145xf32, #tpu.memory_space<vmem>>, vector<1x16x16xf32>,
    %c0_4 = arith.constant 0 : index
    %c7 = arith.constant 7 : index
    %c129 = arith.constant 129 : index
    %5 = vector.load %arg5[%c0_4, %c7, %c129] : memref<1x25x145xf32, #tpu.memory_space<vmem>>, vector<1x18x16xf32>
    %c0_5 = arith.constant 0 : index
    %c7_6 = arith.constant 7 : index
    %c127 = arith.constant 127 : index
    %6 = vector.load %arg5[%c0_5, %c7_6, %c127] : memref<1x25x145xf32, #tpu.memory_space<vmem>>, vector<1x18x16xf32>
    %7 = arith.subf %5, %6 : vector<1x18x16xf32>
    %8 = vector.extract_strided_slice %7 {offsets = [0, 0, 0], sizes = [1, 16, 16], strides = [1, 1, 1]} : vector<1x18x16xf32> to vector<1x16x16xf32>
    %9 = vector.extract_strided_slice %7 {offsets = [0, 1, 0], sizes = [1, 16, 16], strides = [1, 1, 1]} : vector<1x18x16xf32> to vector<1x16x16xf32>
    %cst = arith.constant 2.000000e+00 : f32
    %10 = vector.broadcast %cst : f32 to vector<1x16x16xf32>
    %11 = arith.mulf %10, %9 : vector<1x16x16xf32>
    %12 = arith.addf %8, %11 : vector<1x16x16xf32>
    %13 = vector.extract_strided_slice %7 {offsets = [0, 2, 0], sizes = [1, 16, 16], strides = [1, 1, 1]} : vector<1x18x16xf32> to vector<1x16x16xf32>
    %14 = arith.addf %12, %13 : vector<1x16x16xf32>
    %c0_7 = arith.constant 0 : index
    %c9 = arith.constant 9 : index
    %c127_8 = arith.constant 127 : index
    %15 = vector.load %arg5[%c0_7, %c9, %c127_8] : memref<1x25x145xf32, #tpu.memory_space<vmem>>, vector<1x16x18xf32>
    %c0_9 = arith.constant 0 : index
    %c7_10 = arith.constant 7 : index
    %c127_11 = arith.constant 127 : index
    %16 = vector.load %arg5[%c0_9, %c7_10, %c127_11] : memref<1x25x145xf32, #tpu.memory_space<vmem>>, vector<1x16x18xf32>
    %17 = arith.subf %15, %16 : vector<1x16x18xf32>
    %18 = vector.extract_strided_slice %17 {offsets = [0, 0, 0], sizes = [1, 16, 16], strides = [1, 1, 1]} : vector<1x16x18xf32> to vector<1x16x16xf32>
    %19 = vector.extract_strided_slice %17 {offsets = [0, 0, 1], sizes = [1, 16, 16], strides = [1, 1, 1]} : vector<1x16x18xf32> to vector<1x16x16xf32>
    %cst_12 = arith.constant 2.000000e+00 : f32
    %20 = vector.broadcast %cst_12 : f32 to vector<1x16x16xf32>
    %21 = arith.mulf %20, %19 : vector<1x16x16xf32>
    %22 = arith.addf %18, %21 : vector<1x16x16xf32>
    %23 = vector.extract_strided_slice %17 {offsets = [0, 0, 2], sizes = [1, 16, 16], strides = [1, 1, 1]} : vector<1x16x18xf32> to vector<1x16x16xf32>
    %24 = arith.addf %22, %23 : vector<1x16x16xf32>
    %25 = arith.mulf %14, %14 : vector<1x16x16xf32>
    %26 = arith.mulf %24, %24 : vector<1x16x16xf32>
    %27 = arith.addf %25, %26 : vector<1x16x16xf32>
    %28 = math.sqrt %27 : vector<1x16x16xf32>
    %c0_13 = arith.constant 0 : index
    %c0_14 = arith.constant 0 : index
    %c0_15 = arith.constant 0 : index
    %29 = vector.load %arg3[%c0_13, %c0_14, %c0_15] : memref<1x16x16xf32, #tpu.memory_space<vmem>>, vector<1x16x16xf32>
    %c0_16 = arith.constant 0 : index
    %c8_17 = arith.constant 8 : index
    %c128_18 = arith.constant 128 : index
    %30 = vector.load %arg6[%c0_16, %c8_17, %c128_18] : memref<1x25x145xf32, #tpu.memory_space<vmem>>, vector<1x16x16xf32>
    tpu.vector_store %arg6[%c0_16, %c8_17, %c128_18], %29 {strides = array<i32>} : memref<1x25x145xf32, #tpu.memory_space<vmem>>, vector<1x16x16xf32>,
    %c0_19 = arith.constant 0 : index
    %c7_20 = arith.constant 7 : index
    %c129_21 = arith.constant 129 : index
    %31 = vector.load %arg6[%c0_19, %c7_20, %c129_21] : memref<1x25x145xf32, #tpu.memory_space<vmem>>, vector<1x18x16xf32>
    %c0_22 = arith.constant 0 : index
    %c7_23 = arith.constant 7 : index
    %c127_24 = arith.constant 127 : index
    %32 = vector.load %arg6[%c0_22, %c7_23, %c127_24] : memref<1x25x145xf32, #tpu.memory_space<vmem>>, vector<1x18x16xf32>
    %33 = arith.subf %31, %32 : vector<1x18x16xf32>
    %34 = vector.extract_strided_slice %33 {offsets = [0, 0, 0], sizes = [1, 16, 16], strides = [1, 1, 1]} : vector<1x18x16xf32> to vector<1x16x16xf32>
    %35 = vector.extract_strided_slice %33 {offsets = [0, 1, 0], sizes = [1, 16, 16], strides = [1, 1, 1]} : vector<1x18x16xf32> to vector<1x16x16xf32>
    %cst_25 = arith.constant 2.000000e+00 : f32
    %36 = vector.broadcast %cst_25 : f32 to vector<1x16x16xf32>
    %37 = arith.mulf %36, %35 : vector<1x16x16xf32>
    %38 = arith.addf %34, %37 : vector<1x16x16xf32>
    %39 = vector.extract_strided_slice %33 {offsets = [0, 2, 0], sizes = [1, 16, 16], strides = [1, 1, 1]} : vector<1x18x16xf32> to vector<1x16x16xf32>
    %40 = arith.addf %38, %39 : vector<1x16x16xf32>
    %c0_26 = arith.constant 0 : index
    %c9_27 = arith.constant 9 : index
    %c127_28 = arith.constant 127 : index
    %41 = vector.load %arg6[%c0_26, %c9_27, %c127_28] : memref<1x25x145xf32, #tpu.memory_space<vmem>>, vector<1x16x18xf32>
    %c0_29 = arith.constant 0 : index
    %c7_30 = arith.constant 7 : index
    %c127_31 = arith.constant 127 : index
    %42 = vector.load %arg6[%c0_29, %c7_30, %c127_31] : memref<1x25x145xf32, #tpu.memory_space<vmem>>, vector<1x16x18xf32>
    %43 = arith.subf %41, %42 : vector<1x16x18xf32>
    %44 = vector.extract_strided_slice %43 {offsets = [0, 0, 0], sizes = [1, 16, 16], strides = [1, 1, 1]} : vector<1x16x18xf32> to vector<1x16x16xf32>
    %45 = vector.extract_strided_slice %43 {offsets = [0, 0, 1], sizes = [1, 16, 16], strides = [1, 1, 1]} : vector<1x16x18xf32> to vector<1x16x16xf32>
    %cst_32 = arith.constant 2.000000e+00 : f32
    %46 = vector.broadcast %cst_32 : f32 to vector<1x16x16xf32>
    %47 = arith.mulf %46, %45 : vector<1x16x16xf32>
    %48 = arith.addf %44, %47 : vector<1x16x16xf32>
    %49 = vector.extract_strided_slice %43 {offsets = [0, 0, 2], sizes = [1, 16, 16], strides = [1, 1, 1]} : vector<1x16x18xf32> to vector<1x16x16xf32>
    %50 = arith.addf %48, %49 : vector<1x16x16xf32>
    %51 = arith.mulf %40, %40 : vector<1x16x16xf32>
    %52 = arith.mulf %50, %50 : vector<1x16x16xf32>
    %53 = arith.addf %51, %52 : vector<1x16x16xf32>
    %54 = math.sqrt %53 : vector<1x16x16xf32>
    %55 = arith.subf %28, %54 : vector<1x16x16xf32>
    %56 = math.absf %55 : vector<1x16x16xf32>
    %c0_33 = arith.constant 0 : index
    %c0_34 = arith.constant 0 : index
    %57 = vector.load %arg7[%c0_33, %c0_34] : memref<16x16xf32, #tpu.memory_space<vmem>>, vector<16x16xf32>
    %cst_35 = arith.constant dense<0.000000e+00> : vector<16x16xf32>
    %58 = vector.multi_reduction <add>, %56, %cst_35 [0] : vector<1x16x16xf32> to vector<16x16xf32>
    %59 = arith.addf %57, %58 : vector<16x16xf32>
    %c0_36 = arith.constant 0 : index
    %c0_37 = arith.constant 0 : index
    %60 = vector.load %arg7[%c0_36, %c0_37] : memref<16x16xf32, #tpu.memory_space<vmem>>, vector<16x16xf32>
    tpu.vector_store %arg7[%c0_36, %c0_37], %59 {strides = array<i32>} : memref<16x16xf32, #tpu.memory_space<vmem>>, vector<16x16xf32>,
    %c0_i32_38 = arith.constant 0 : i32
    %61 = arith.cmpi eq, %arg1, %c0_i32_38 : i32
    %62 = arith.extui %61 : i1 to i32
    %c0_i32_39 = arith.constant 0 : i32
    %63 = arith.cmpi ne, %62, %c0_i32_39 : i32
    scf.if %63 {
      %c0_40 = arith.constant 0 : index
      %c0_41 = arith.constant 0 : index
      %64 = vector.load %arg7[%c0_40, %c0_41] : memref<16x16xf32, #tpu.memory_space<vmem>>, vector<16x16xf32>
      %65 = vector.shape_cast %64 : vector<16x16xf32> to vector<1x16x16xf32>
      %cst_42 = arith.constant dense<0.000000e+00> : vector<1xf32>
      %66 = vector.multi_reduction <add>, %65, %cst_42 [1, 2] : vector<1x16x16xf32> to vector<1xf32>
      %67 = vector.shape_cast %66 : vector<1xf32> to vector<1x1x1xf32>
      %68 = vector.extract %67[0, 0, 0] : f32 from vector<1x1x1xf32>
      %cst_43 = arith.constant 0.001953125 : f32
      %69 = arith.mulf %68, %cst_43 : f32
      %70 = vector.broadcast %69 : f32 to vector<1x8x128xf32>
      %c0_44 = arith.constant 0 : index
      %c0_45 = arith.constant 0 : index
      %c0_46 = arith.constant 0 : index
      %71 = vector.load %arg4[%c0_44, %c0_45, %c0_46] : memref<1x8x128xf32, #tpu.memory_space<vmem>>, vector<1x8x128xf32>
      tpu.vector_store %arg4[%c0_44, %c0_45, %c0_46], %70 {strides = array<i32>} : memref<1x8x128xf32, #tpu.memory_space<vmem>>, vector<1x8x128xf32>,
    } else {
    }
    return
  }
  func.func @transform_0(%arg0: i32, %arg1: i32) -> (i32, i32, i32) {
    %c1_i32 = arith.constant 1 : i32
    %0 = arith.muli %arg0, %c1_i32 : i32
    %1 = arith.addi %0, %arg1 : i32
    %c0_i32 = arith.constant 0 : i32
    %c0_i32_0 = arith.constant 0 : i32
    %c0_i32_1 = arith.constant 0 : i32
    return %1, %c0_i32, %c0_i32_0 : i32, i32, i32
  }
  func.func @transform_1(%arg0: i32, %arg1: i32) -> (i32, i32, i32) {
    %c1_i32 = arith.constant 1 : i32
    %0 = arith.muli %arg0, %c1_i32 : i32
    %1 = arith.addi %0, %arg1 : i32
    %c0_i32 = arith.constant 0 : i32
    %c0_i32_0 = arith.constant 0 : i32
    %c0_i32_1 = arith.constant 0 : i32
    return %1, %c0_i32, %c0_i32_0 : i32, i32, i32
  }
  func.func @transform_2(%arg0: i32, %arg1: i32) -> (i32, i32, i32) {
    %c0_i32 = arith.constant 0 : i32
    %c0_i32_0 = arith.constant 0 : i32
    %c0_i32_1 = arith.constant 0 : i32
    return %arg0, %c0_i32, %c0_i32_0 : i32, i32, i32
  }
}

</mosaic_0001>

<bundles_post_ra>
// kernel: tpu_custom_call.1
= control target key start
LH: loop header
LB: loop body
LE: loop exit
PB: predicated region body
PF: predicated region fallthrough
CT: control target
= control target key end

     0   :  { %7 = vsyncpa [#allocation6], 0  ;;  %s1500_s0 = inlined_call_operand.hbm [shape: f32[2,16,16], index: 0, kind: input, shape index: {}]   ;;  %s1501_s1 = inlined_call_operand.hbm [shape: f32[2,16,16], index: 1, kind: input, shape index: {}]   ;;  %s1502_s2 = inlined_call_operand.hbm [shape: f32[2,8,128], index: 2, kind: output, shape index: {}]  }
   0x1   :  { %9 = vsyncpa [#allocation6 + $0x1], 0 }
   0x2   :  { %10 = vsyncpa [#allocation9], 0 }
   0x3   :  { %12 = vsyncpa [#allocation9 + $0x1], 0 }
   0x4   :  { %13 = vsyncpa [#allocation7], 0 }
   0x5   :  { %15 = vsyncpa [#allocation7 + $0x1], 0  ;;  %s1110_s9 = smov 0   ;;  %s1112_s10 = smov 0  }
   0x6   :  { %s1114_s11 = smov 0   ;;  %s1116_s12 = smov 0  }
   0x7   :  { %s1118_s13 = smov 0   ;;  %s1120_s14 = smov 0  }
   0x8 LB: > { %s837_s15 = sadd.s32 4294967295, %s1084_s14   ;;  %s838_s16 = sadd.s32 4294967294, %s1084_s14   ;;  %s1084_s14 = sphi %s1120_s14, %s21_s14   ;;  %s1080_s13 = sphi %s1118_s13, %s1513_s13   ;;  %s1076_s12 = sphi %s1116_s12, %s1512_s12   ;;  %s1072_s11 = sphi %s1114_s11, %s1511_s11   ;;  %s1068_s10 = sphi %s1112_s10, %s1510_s10   ;;  %s1064_s9 = sphi %s1110_s9, %s1509_s9  }
   0x9   : > { %s33_s17 = sadd.s32 1, %s1080_s13  ;;  %s42_s18 = sadd.s32 1, %s1072_s11 }
   0xa   : > { %p35_p0 = scmp.ge.s32.totalorder %s33_s17, 2  ;;  %p49_p1 = scmp.ne.s32.totalorder %s1072_s11, %s1068_s10 }
   0xb   : > { %p50_p2 = scmp.eq.s32.totalorder %s1084_s14, 0  ;;  %p55_p3 = scmp.ne.s32.totalorder %s1068_s10, %s1064_s9 }
   0xc   : > { %s1515_s17 = smov (%p35_p0, %s33_s17), 0  ;;  %p56_p5 = scmp.eq.s32.totalorder %s837_s15, 0 }
   0xd   : > { %p1151_p4 = por %p50_p2, %p49_p1  ;;  %s39_s20 = ssub.s32 %s1080_s13, %s1515_s17 }
   0xe   : > { %p107_p6 = scmp.eq.s32.totalorder %s837_s15, 1  ;;  %p40_p7 = scmp.eq.s32.totalorder %s39_s20, 0 }
   0xf   : > { %p1157_p8 = por %p56_p5, %p55_p3  ;;  %p113_p10 = scmp.eq.s32.totalorder %s838_s16, 1 }
  0x10   : > { %p1161_p9 = por %p107_p6, %p49_p1  ;;  %p840_p12 = scmp.ge.s32.totalorder %s1084_s14, 2 }
  0x11   : > { %s1166_s23 = scalar_select %p40_p7, %s1072_s11, %s42_s18  }
  0x12   : > { %p1168_p11 = por %p113_p10, %p55_p3  ;;  %p876_p13 = scmp.lt.s32.totalorder %s1084_s14, 2 }
  0x13   : > { %s1175_s25 = sand.u32 1, %s1072_s11   ;;  %s855_s27 = sshll.u32 %s1080_s13, 8 }
  0x14   : > { %s841_s26 = sshll.u32 %s1175_s25, 4  ;;  %s144_s30 = scalar_lea.hbm %s1500_s0, %s855_s27 }
  0x15   : > { %s137_s3 = scalar_lea.vmem [#allocation5], %s841_s26  ;;  %p1188_p0 = pnand %p876_p13, %p1151_p4 }
  0x16   : > { %s145_s4 = sshll.u32 %s137_s3, 4  ;;  %p847_p1 = scmp.ge.s32.totalorder %s1084_s14, 1  ;;  %s146_s4 = int_to_ptr.vmem [resolvable:$true] %s145_s4 }
  0x17   : > { %s134_s6 = scalar_lea.sflag [#allocation6], %s1175_s25  ;;  %p946_p2 = pneg %p1188_p0 }
  0x18   : > { %s957_s7 = scalar_lea.vmem %s146_s4, 256  ;;  %s1086_s8 = smov [#allocation5]  }
  0x19   : > { %p958_p3 = scmp.ne.s32.totalorder %s146_s4, %s957_s7  ;;  %s962_s15 = sshll.u32 %s1086_s8, 4  ;;  %s963_s15 = int_to_ptr.vmem [resolvable:$false] %s962_s15 }
  0x1a   : > { %s964_s16 = scalar_lea.vmem %s963_s15, 512  ;;  %p965_p4 = scmp.lt.s32.totalorder %s146_s4, %s963_s15 }
  0x1b   : > { %p960_p5 = pnand %p958_p3, %p946_p2  ;;  %p966_p7 = scmp.lt.s32.totalorder %s964_s16, %s957_s7 }
  0x1d   : > { %p961_p6 = pneg %p960_p5  ;;  %p967_p10 = por %p966_p7, %p965_p4 }
  0x1f   : > { %p968_p13 = pnand %p967_p10, %p961_p6 }
  0x21   : > { %971 = shalt.err (!%p968_p13)
}
  0x22   : > { %s1087_s18 = smov 128   ;;  %s1088_s19 = smov 8  }
  0x23   : > { %868 = dma.hbm_to_vmem [thread:$0]  (!%p1188_p0), %s144_s30, 256, %s146_s4, %s134_s6, %s1087_s18, %s1087_s18, %s1088_s19  }
  0x24   : > { %p175_p3 = scmp.lt.s32.totalorder %s1084_s14, 3  ;;  %s166_s29 = scalar_lea.hbm %s1501_s1, %s855_s27 }
  0x25   : > { %s159_s7 = scalar_lea.vmem [#allocation8], %s841_s26  ;;  %s156_s15 = scalar_lea.sflag [#allocation9], %s1175_s25 }
  0x26   : > { %p1209_p5 = pnand %p847_p1, %p175_p3  ;;  %s167_s8 = sshll.u32 %s159_s7, 4  ;;  %s168_s8 = int_to_ptr.vmem [resolvable:$true] %s167_s8 }
  0x27   : > { %s985_s16 = scalar_lea.vmem %s168_s8, 256  ;;  %s1089_s30 = smov [#allocation8]  }
  0x28   : > { %p986_p6 = scmp.ne.s32.totalorder %s168_s8, %s985_s16  ;;  %s990_s4 = sshll.u32 %s1089_s30, 4  ;;  %s991_s4 = int_to_ptr.vmem [resolvable:$false] %s990_s4 }
  0x29   : > { %s992_s27 = scalar_lea.vmem %s991_s4, 512  ;;  %p993_p10 = scmp.lt.s32.totalorder %s168_s8, %s991_s4 }
  0x2a   : > { %p988_p4 = pnand %p986_p6, %p946_p2  ;;  %p994_p1 = scmp.lt.s32.totalorder %s992_s27, %s985_s16 }
  0x2c   : > { %p989_p7 = pneg %p988_p4  ;;  %p995_p13 = por %p994_p1, %p993_p10 }
  0x2e   : > { %p996_p3 = pnand %p995_p13, %p989_p7 }
  0x30   : > { %999 = shalt.err (!%p996_p3)
}
  0x31   : > { %871 = dma.hbm_to_vmem [thread:$0]  (!%p1188_p0), %s166_s29, 256, %s168_s8, %s156_s15, %s1087_s18, %s1087_s18, %s1088_s19  }
  0x32   : > { %179 = sbr.rel (%p1209_p5) target bundleno = 723 (0x2d3), region = 28  ;;  %s1224_s25 = sand.u32 (!%p1209_p5), 1, %s1068_s10  }
  0x33   : > { %s848_s26 = sshll.u32 (!%p1209_p5), %s1224_s25, 4  ;;  %s182_s6 = scalar_lea.sflag (!%p1209_p5), [#allocation6], %s1224_s25 }
  0x34   : > { %s185_s20 = scalar_lea.vmem (!%p1209_p5), [#allocation5], %s848_s26 }
  0x37   : > { %1051 = dma.done.wait (%p1157_p8), %s182_s6, 256  }
  0x38   : > { %1053 = vsyncadd (%p1157_p8), %s182_s6, 4294967040  ;;  %s191_s5 = scalar_lea.sflag [#allocation9], %s1224_s25  ;;  %s1233_s18 = scalar_lea.vmem [#allocation8], %s848_s26 }
  0x39   : > { %1055 = dma.done.wait (%p1157_p8), %s191_s5, 256  }
  0x3a   : > { %1057 = vsyncadd (%p1157_p8), %s191_s5, 4294967040  ;;  %vm226_vm0 = vcmask 130048   ;;  %vm230_vm1 = vcmask 138240   ;;  %vm237_vm2 = vcmask 131072   ;;  %v1090_v0 = vmov 0.0   ;;  %v248_v1 = vld [vmem:[%s185_s20 + $0x8] sm:$0xff] }
  0x3b   : > { %235 = vst.msk [vmem:[#allocation2 + $0x28] sm:$0xff] %vm230_vm1, %v1090_v0  ;;  %229 = vst [vmem:[#allocation2] sm:$0xff] %v1090_v0  ;;  %v247_v2 = vld [vmem:[%s185_s20] sm:$0xff]  ;;  %v462_v4 = vld [vmem:[%s1233_s18 + $0x8] sm:$0xff]  ;;  %v334_v5 = vrot.slane %v1090_v0, 6  ;;  %vm332_vm3 = vcmask 1041408  }
  0x3c   : > { %238 = vst.msk [vmem:[#allocation2 + $0x38] sm:$0x1] %vm237_vm2, %v1090_v0  ;;  %232 = vst [vmem:[#allocation2 + $0x10] sm:$0xff] %v1090_v0  ;;  %v461_v3 = vld [vmem:[%s1233_s18] sm:$0xff]  ;;  %s1091_s21 = smov 126   ;;  %s1092_s19 = smov 127  }
  0x3d   : > { %227 = vst.msk [vmem:[#allocation4] sm:$0xff] %vm226_vm0, %v1090_v0  ;;  %228 = vst.msk [vmem:[#allocation4 + $0x8] sm:$0xff] %vm226_vm0, %v1090_v0  ;;  %s1093_s28 = smov 2   ;;  %vm314_vm4 = vcmask 1045504   ;;  %vm284_vm5 = vcmask 15360   ;;  %vm301_vm6 = vcmask 1046528  }
  0x3e   : > { %231 = vst.msk [vmem:[#allocation2 + $0x8] sm:$0xff] %vm230_vm1, %v1090_v0  ;;  %233 = vst.msk [vmem:[#allocation2 + $0x18] sm:$0xff] %vm230_vm1, %v1090_v0  ;;  %s850_s29 = sshll.u32 %s1224_s25, 3  ;;  %s852_s8 = sshll.u32 %s1076_s12, 7 }
  0x3f   : > { %234 = vst [vmem:[#allocation2 + $0x20] sm:$0xff] %v1090_v0  ;;  %236 = vst [vmem:[#allocation2 + $0x30] sm:$0x1] %v1090_v0  ;;  %s219_s3 = scalar_lea.vmem [#allocation10], %s850_s29  ;;  %s1458_s27 = scalar_lea.hbm %s1502_s2, %s852_s8 }
  0x40   : > { %239 = vst [vmem:[#allocation3] sm:$0xff] %v1090_v0  ;;  %240 = vst.msk [vmem:[#allocation3 + $0x8] sm:$0xff] %vm230_vm1, %v1090_v0  ;;  %s734_s7 = sshll.u32 %s219_s3, 4  ;;  %s721_s26 = scalar_lea.sflag [#allocation7], %s1224_s25  ;;  %s735_s7 = int_to_ptr.vmem [resolvable:$true] %s734_s7 }
  0x41   : > { %241 = vst [vmem:[#allocation3 + $0x10] sm:$0xff] %v1090_v0  ;;  %242 = vst.msk [vmem:[#allocation3 + $0x18] sm:$0xff] %vm230_vm1, %v1090_v0  ;;  %s1000_s6 = scalar_lea.vmem %s735_s7, 128  ;;  %s1094_s20 = smov [#allocation10]  }
  0x42   : > { %243 = vst [vmem:[#allocation3 + $0x20] sm:$0xff] %v1090_v0  ;;  %244 = vst.msk [vmem:[#allocation3 + $0x28] sm:$0xff] %vm230_vm1, %v1090_v0  ;;  %v1282_v11 = vld [vmem:[#allocation2] sm:$0x80]  ;;  %p1001_p8 = scmp.ne.s32.totalorder %s735_s7, %s1000_s6  ;;  %s1004_s5 = sshll.u32 %s1094_s20, 4  ;;  %s1005_s5 = int_to_ptr.vmem [resolvable:$false] %s1004_s5 }
  0x43   : > { %245 = vst [vmem:[#allocation3 + $0x30] sm:$0x1] %v1090_v0  ;;  %246 = vst.msk [vmem:[#allocation3 + $0x38] sm:$0x1] %vm237_vm2, %v1090_v0  ;;  %v333_v13 = vrot.slane %v1282_v11, 6  ;;  %s1006_s12 = scalar_lea.vmem %s1005_s5, 256  ;;  %p1007_p5 = scmp.lt.s32.totalorder %s735_s7, %s1005_s5 }
  0x44   : > { %251 = vst.msk [vmem:[#allocation2 + $0x28] sm:$0xff] %vm226_vm0, %v248_v1  ;;  %250 = vst.msk [vmem:[#allocation2 + $0x18] sm:$0xff] %vm226_vm0, %v247_v2  ;;  %v1303_v20 = vld [vmem:[#allocation2 + $0x38] sm:$0x1]  ;;  %v326_v58 = vld [vmem:[#allocation2 + $0x10] sm:$0xfe]  ;;  %p1002_p0 = pnand %p1001_p8, %p1161_p9  ;;  %p1008_p6 = scmp.lt.s32.totalorder %s1006_s12, %s1000_s6 }
  0x45   : > { %463 = vst.msk [vmem:[#allocation3 + $0x18] sm:$0xff] %vm226_vm0, %v461_v3  ;;  %464 = vst.msk [vmem:[#allocation3 + $0x28] sm:$0xff] %vm226_vm0, %v462_v4  ;;  %v1278_v8 = vld [vmem:[#allocation2 + $0x8] sm:$0x80]  ;;  %v1301_v19 = vsel %vm332_vm3, %v333_v13, %v334_v5 }
  0x46   : > { %v1274_v6 = vld [vmem:[#allocation2 + $0x20] sm:$0x7f]  ;;  %v336_v16 = vrot.slane %v1278_v8, 6  ;;  %v259_v54 = vld [vmem:[#allocation2 + $0x30] sm:$0x1]  ;;  %v349_v61 = vsub.f32 %v326_v58, %v1301_v19  ;;  %p1003_p2 = pneg %p1002_p0  ;;  %p1009_p4 = por %p1008_p6, %p1007_p5 }
  0x47   : > { %v339_v9 = vrot.slane %v1274_v6, 6  ;;  %v1284_v12 = vld [vmem:[#allocation3 + $0x8] sm:$0x80]  ;;  %v469_v28 = vld [vmem:[#allocation3] sm:$0x80] }
  0x48   : > { %v545_v23 = vrot.slane %v1284_v12, 6  ;;  %v542_v31 = vrot.slane %v469_v28, 6  ;;  %p1010_p7 = pnand %p1009_p4, %p1003_p2 }
  0x49   : > { %v1276_v7 = vld [vmem:[#allocation3 + $0x20] sm:$0x7f]  ;;  %v1290_v14 = vsel %vm332_vm3, %v334_v5, %v339_v9  ;;  %v353_v62 = vsub.f32 %v259_v54, %v339_v9 }
  0x4a   : > { %v548_v10 = vrot.slane %v1276_v7, 6  ;;  %v351_v17 = vsub.f32 0.0, %v1290_v14  ;;  %v1328_v42 = vsel %vm332_vm3, %v542_v31, %v334_v5  ;;  %v1330_v43 = vld [vmem:[#allocation3 + $0x38] sm:$0x1]  ;;  %v472_v55 = vld [vmem:[#allocation3 + $0x30] sm:$0x1] }
  0x4b   : > { %v329_v21 = vld [vmem:[#allocation2 + $0x28] sm:$0x7f]  ;;  %v1305_v22 = vld [vmem:[#allocation2 + $0x18] sm:$0xff] }
  0x4c   : > { %v1295_v15 = vsel %vm332_vm3, %v334_v5, %v548_v10  ;;  %v341_v24 = vrot.slane %v329_v21, 6  ;;  %v1308_v25 = vld [vmem:[#allocation2 + $0x28] sm:$0xff]  ;;  %v337_v26 = vrot.slane %v1305_v22, 6  ;;  %v1311_v27 = vld [vmem:[#allocation3 + $0x18] sm:$0xff] }
  0x4d   : > { %v560_v18 = vsub.f32 0.0, %v1295_v15  ;;  %v327_v29 = vld [vmem:[#allocation2 + $0x18] sm:$0xfe]  ;;  %v546_v30 = vrot.slane %v1311_v27, 6  ;;  %v539_v36 = vld [vmem:[#allocation3 + $0x28] sm:$0x7f] }
  0x4e   : > { %v1315_v32 = vsub.f32 %v1303_v20, %v341_v24  ;;  %v342_v33 = vsel %vm332_vm3, %v337_v26, %v341_v24  ;;  %v338_v34 = vsel %vm332_vm3, %v336_v16, %v337_v26  ;;  %v537_v35 = vld [vmem:[#allocation3 + $0x18] sm:$0xfe]  ;;  %v550_v41 = vrot.slane %v539_v36, 6  ;;  %v1337_v47 = vld [vmem:[#allocation3 + $0x28] sm:$0xff] }
  0x4f   : > { %v1320_v37 = vsub.f32 %v1308_v25, %v342_v33  ;;  %v547_v38 = vsel %vm332_vm3, %v545_v23, %v546_v30  ;;  %v350_v39 = vsub.f32 %v327_v29, %v338_v34 }
  0x50   : > { %383 = vrot.lane.b32.xlu0 %v1315_v32, %s1091_s21  ;;  %v1325_v40 = vsub.f32 %v537_v35, %v547_v38  ;;  %v357_v45 = vmul.f32 2.0, %v1315_v32  ;;  %v1335_v46 = vsub.f32 %v1330_v43, %v550_v41  ;;  %v551_v48 = vsel %vm332_vm3, %v546_v30, %v550_v41 }
  0x51   : > { %381 = vrot.lane.b32.xlu1 %v1320_v37, %s1091_s21  ;;  %v355_v44 = vmul.f32 2.0, %v350_v39  ;;  %v356_v49 = vmul.f32 2.0, %v1320_v37  ;;  %v1343_v50 = vsub.f32 %v1337_v47, %v551_v48  ;;  %v562_v30 = vsub.f32 %v472_v55, %v548_v10 }
  0x52   : > { %v566_v51 = vmul.f32 2.0, %v1335_v46  ;;  %v564_v53 = vmul.f32 2.0, %v1325_v40 }
  0x53   : > { %v565_v52 = vmul.f32 2.0, %v1343_v50 }
  0x54   : > { %379 = vrot.lane.b32.xlu0 %v350_v39, %s1091_s21 }
  0x55   : > { %588 = vrot.lane.b32.xlu1 %v1325_v40, %s1091_s21 }
  0x58   : > { %361 = vrot.lane.b32.xlu0 %v355_v44, %s1092_s19 }
  0x59   : > { %365 = vrot.lane.b32.xlu1 %v357_v45, %s1092_s19 }
  0x5c   : > { %363 = vrot.lane.b32.xlu0 %v356_v49, %s1092_s19 }
  0x5d   : > { %574 = vrot.lane.b32.xlu1 %v566_v51, %s1092_s19 }
  0x60   : > { %572 = vrot.lane.b32.xlu0 %v565_v52, %s1092_s19 }
  0x61   : > { %570 = vrot.lane.b32.xlu1 %v564_v53, %s1092_s19 }
  0x64   : > { %590 = vrot.lane.b32.xlu0 %v1343_v50, %s1091_s21 }
  0x65   : > { %592 = vrot.lane.b32.xlu1 %v1335_v46, %s1091_s21 }
  0x68   : > { %272 = vrot.lane.b32.xlu0 %v1090_v0, %s1093_s28 }
  0x69   : > { %274 = vrot.lane.b32.xlu1 %v1305_v22, %s1093_s28 }
  0x6c   : > { %276 = vrot.lane.b32.xlu0 %v1090_v0, %s1093_s28 }
  0x6d   : > { %278 = vrot.lane.b32.xlu1 %v1308_v25, %s1093_s28 }
  0x70   : > { %485 = vrot.lane.b32.xlu0 %v1090_v0, %s1093_s28 }
  0x71   : > { %487 = vrot.lane.b32.xlu1 %v1311_v27, %s1093_s28 }
  0x74   : > { %489 = vrot.lane.b32.xlu0 %v1090_v0, %s1093_s28 }
  0x75   : > { %491 = vrot.lane.b32.xlu1 %v1337_v47, %s1093_s28 }
  0x78   : > { %280 = vrot.lane.b32.xlu0 %v259_v54, %s1093_s28 }
  0x79   : > { %282 = vrot.lane.b32.xlu1 %v1303_v20, %s1093_s28 }
  0x7c   : > { %493 = vrot.lane.b32.xlu0 %v472_v55, %s1093_s28 }
  0x7d   : > { %495 = vrot.lane.b32.xlu1 %v1330_v43, %s1093_s28 }
  0x80   : > { %268 = vrot.lane.b32.xlu0 %v1282_v11, %s1093_s28  ;;  %v536_v11 = vld [vmem:[#allocation3 + $0x10] sm:$0xfe] }
  0x81   : > { %270 = vrot.lane.b32.xlu1 %v1278_v8, %s1093_s28  ;;  %v558_v6 = vsub.f32 %v536_v11, %v1328_v42 }
  0x84   : > { %481 = vrot.lane.b32.xlu0 %v469_v28, %s1093_s28 }
  0x85   : > { %483 = vrot.lane.b32.xlu1 %v1284_v12, %s1093_s28 }
  0xc2   : > { %v384_v56 = vpop.permute.xlu0 %383 }
  0xc3   : > { %v382_v57 = vpop.permute.xlu1 %381 }
  0xc6   : > { %v380_v59 = vpop.permute.xlu0 %379 }
  0xc7   : > { %v589_v60 = vpop.permute.xlu1 %588 }
  0xca   : > { %v362_v63 = vpop.permute.xlu0 %361 }
  0xcb   : > { %v370_v0 = vadd.f32 %v362_v63, %v349_v61  ;;  %v371_v1 = vadd.f32 %v362_v63, %v350_v39  ;;  %v366_v2 = vpop.permute.xlu1 %365 }
  0xcc   : > { %v374_v3 = vadd.f32 %v366_v2, %v353_v62  ;;  %v375_v38 = vadd.f32 %v366_v2, %v1315_v32 }
  0xcd   : > { %v388_v4 = vadd.f32 %v380_v59, %v370_v0  ;;  %v389_v5 = vadd.f32 %v380_v59, %v371_v1 }
  0xce   : > { %v392_v13 = vadd.f32 %v384_v56, %v374_v3  ;;  %v364_v16 = vpop.permute.xlu0 %363  ;;  %v393_v53 = vadd.f32 %v384_v56, %v375_v38 }
  0xcf   : > { %v397_v21 = vmul.f32 %v388_v4, %v388_v4  ;;  %v398_v23 = vmul.f32 %v389_v5, %v389_v5  ;;  %v372_v24 = vadd.f32 %v364_v16, %v351_v17  ;;  %v373_v19 = vadd.f32 %v364_v16, %v1320_v37  ;;  %v575_v26 = vpop.permute.xlu1 %574 }
  0xd0   : > { %v401_v31 = vmul.f32 %v392_v13, %v392_v13  ;;  %v583_v39 = vadd.f32 %v575_v26, %v562_v30  ;;  %v584_v63 = vadd.f32 %v575_v26, %v1335_v46 }
  0xd1   : > { %v390_v9 = vadd.f32 %v382_v57, %v372_v24  ;;  %v410_v28 = vrot.slane %v398_v23, 2  ;;  %v409_v29 = vrot.slane %v397_v21, 2  ;;  %v391_v34 = vadd.f32 %v382_v57, %v373_v19 }
  0xd2   : > { %v573_v33 = vpop.permute.xlu0 %572  ;;  %v415_v10 = vrot.slane %v401_v31, 2 }
  0xd3   : > { %v399_v35 = vmul.f32 %v390_v9, %v390_v9  ;;  %v581_v36 = vadd.f32 %v573_v33, %v560_v18  ;;  %v571_v14 = vpop.permute.xlu1 %570  ;;  %421 = vrot.lane.b32.xlu1 %v410_v28, %s1093_s28  ;;  %419 = vrot.lane.b32.xlu0 %v409_v29, %s1093_s28  ;;  %v400_v45 = vmul.f32 %v391_v34, %v391_v34 }
  0xd4   : > { %v579_v17 = vadd.f32 %v571_v14, %v558_v6  ;;  %v580_v37 = vadd.f32 %v571_v14, %v1325_v40  ;;  %v582_v15 = vadd.f32 %v573_v33, %v1343_v50  ;;  %v402_v50 = vmul.f32 %v393_v53, %v393_v53 }
  0xd5   : > { %v411_v7 = vrot.slane %v399_v35, 2  ;;  %v413_v59 = vrot.slane %v400_v45, 2 }
  0xd6   : > { %v597_v41 = vadd.f32 %v589_v60, %v579_v17  ;;  %v598_v42 = vadd.f32 %v589_v60, %v580_v37  ;;  %v591_v44 = vpop.permute.xlu0 %590  ;;  %v417_v4 = vrot.slane %v402_v50, 2 }
  0xd7   : > { %v599_v18 = vadd.f32 %v591_v44, %v581_v36  ;;  %v593_v48 = vpop.permute.xlu1 %592  ;;  %v412_v49 = vsel %vm314_vm4, %v409_v29, %v411_v7  ;;  %v416_v32 = vsel %vm314_vm4, %v411_v7, %v415_v10  ;;  %v600_v60 = vadd.f32 %v591_v44, %v582_v15 }
  0xd8   : > { %v606_v51 = vmul.f32 %v597_v41, %v597_v41  ;;  %v607_v40 = vmul.f32 %v598_v42, %v598_v42  ;;  %v601_v52 = vadd.f32 %v593_v48, %v583_v39  ;;  %v602_v2 = vadd.f32 %v593_v48, %v584_v63 }
  0xd9   : > { %v608_v54 = vmul.f32 %v599_v18, %v599_v18  ;;  %v609_v1 = vmul.f32 %v600_v60, %v600_v60  ;;  %v414_v3 = vsel %vm314_vm4, %v410_v28, %v413_v59  ;;  %v418_v13 = vsel %vm314_vm4, %v413_v59, %v417_v4 }
  0xda   : > { %v610_v55 = vmul.f32 %v601_v52, %v601_v52  ;;  %v619_v57 = vrot.slane %v607_v40, 2  ;;  %v618_v58 = vrot.slane %v606_v51, 2  ;;  %v611_v11 = vmul.f32 %v602_v2, %v602_v2  ;;  %v273_v24 = vpop.permute.xlu0 %272 }
  0xdb   : > { %v620_v61 = vrot.slane %v608_v54, 2  ;;  %v622_v5 = vrot.slane %v609_v1, 2  ;;  %v275_v23 = vpop.permute.xlu1 %274 }
  0xdc   : > { %v624_v62 = vrot.slane %v610_v55, 2  ;;  %630 = vrot.lane.b32.xlu1 %v619_v57, %s1093_s28  ;;  %628 = vrot.lane.b32.xlu0 %v618_v58, %s1093_s28  ;;  %v626_v46 = vrot.slane %v611_v11, 2  ;;  %v286_v35 = vsel %vm284_vm5, %v273_v24, %v275_v23 }
  0xdd   : > { %v621_v0 = vsel %vm314_vm4, %v618_v58, %v620_v61  ;;  %v623_v16 = vsel %vm314_vm4, %v619_v57, %v622_v5  ;;  %v294_v38 = vsub.f32 %v1305_v22, %v286_v35 }
  0xde   : > { %v625_v56 = vsel %vm314_vm4, %v620_v61, %v624_v62  ;;  %v627_v21 = vsel %vm314_vm4, %v622_v5, %v626_v46  ;;  %v277_v26 = vpop.permute.xlu0 %276 }
  0xdf   : > { %v279_v19 = vpop.permute.xlu1 %278  ;;  %v297_v42 = vmul.f32 2.0, %v294_v38 }
  0xe0   : > { %425 = vrot.lane.b32.xlu1 %v414_v3, %s1093_s28  ;;  %423 = vrot.lane.b32.xlu0 %v412_v49, %s1093_s28  ;;  %v287_v14 = vsel %vm284_vm5, %v277_v26, %v279_v19 }
  0xe1   : > { %v295_v10 = vsub.f32 %v1308_v25, %v287_v14  ;;  %v302_v49 = vrot.slane %v297_v42, 1 }
  0xe2   : > { %v486_v9 = vpop.permute.xlu0 %485 }
  0xe3   : > { %v488_v6 = vpop.permute.xlu1 %487  ;;  %v298_v45 = vmul.f32 2.0, %v295_v10  ;;  %v316_v57 = vrot.slane %v295_v10, 2 }
  0xe4   : > { %429 = vrot.lane.b32.xlu1 %v418_v13, %s1093_s28  ;;  %427 = vrot.lane.b32.xlu0 %v416_v32, %s1093_s28  ;;  %v498_v36 = vsel %vm284_vm5, %v486_v9, %v488_v6  ;;  %v315_v32 = vrot.slane %v294_v38, 2 }
  0xe5   : > { %v506_v7 = vsub.f32 %v1311_v27, %v498_v36  ;;  %v303_v27 = vrot.slane %v298_v45, 1 }
  0xe6   : > { %v490_v29 = vpop.permute.xlu0 %489 }
  0xe7   : > { %v492_v28 = vpop.permute.xlu1 %491  ;;  %v509_v44 = vmul.f32 2.0, %v506_v7  ;;  %v525_v55 = vrot.slane %v506_v7, 2  ;;  %v304_v60 = vsel %vm301_vm6, %v302_v49, %v303_v27  ;;  %v310_v2 = vadd.f32 %v303_v27, %v295_v10 }
  0xe8   : > { %634 = vrot.lane.b32.xlu1 %v623_v16, %s1093_s28  ;;  %632 = vrot.lane.b32.xlu0 %v621_v0, %s1093_s28  ;;  %v499_v48 = vsel %vm284_vm5, %v490_v29, %v492_v28  ;;  %v309_v50 = vadd.f32 %v304_v60, %v294_v38  ;;  %v317_v0 = vsel %vm314_vm4, %v315_v32, %v316_v57 }
  0xe9   : > { %v513_v40 = vrot.slane %v509_v44, 1  ;;  %v507_v25 = vsub.f32 %v1337_v47, %v499_v48 }
  0xea   : > { %v281_v31 = vpop.permute.xlu0 %280  ;;  %v324_v13 = vadd.f32 %v317_v0, %v309_v50 }
  0xeb   : > { %v283_v30 = vpop.permute.xlu1 %282  ;;  %v510_v58 = vmul.f32 2.0, %v507_v25  ;;  %v526_v3 = vrot.slane %v507_v25, 2 }
  0xec   : > { %638 = vrot.lane.b32.xlu1 %v627_v21, %s1093_s28  ;;  %636 = vrot.lane.b32.xlu0 %v625_v56, %s1093_s28  ;;  %v288_v52 = vsel %vm284_vm5, %v281_v31, %v283_v30  ;;  %v395_v6 = vmul.f32 %v324_v13, %v324_v13 }
  0xed   : > { %v296_v59 = vsub.f32 %v1303_v20, %v288_v52  ;;  %v514_v63 = vrot.slane %v510_v58, 1 }
  0xee   : > { %v494_v34 = vpop.permute.xlu0 %493 }
  0xef   : > { %v496_v33 = vpop.permute.xlu1 %495  ;;  %v318_v47 = vrot.slane %v296_v59, 2  ;;  %v515_v23 = vsel %vm301_vm6, %v513_v40, %v514_v63 }
  0xf0   : > { %v500_v56 = vsel %vm284_vm5, %v494_v34, %v496_v33  ;;  %v520_v29 = vadd.f32 %v515_v23, %v506_v7  ;;  %v527_v33 = vsel %vm314_vm4, %v525_v55, %v526_v3 }
  0xf1   : > { %v508_v46 = vsub.f32 %v1330_v43, %v500_v56  ;;  %v319_v21 = vsel %vm314_vm4, %v316_v57, %v318_v47 }
  0xf2   : > { %v269_v37 = vpop.permute.xlu0 %268  ;;  %v325_v28 = vadd.f32 %v319_v21, %v310_v2  ;;  %v534_v14 = vadd.f32 %v527_v33, %v520_v29 }
  0xf3   : > { %v271_v17 = vpop.permute.xlu1 %270  ;;  %v528_v30 = vrot.slane %v508_v46, 2 }
  0xf4   : > { %v285_v15 = vsel %vm284_vm5, %v269_v37, %v271_v17  ;;  %v396_v35 = vmul.f32 %v325_v28, %v325_v28  ;;  %v521_v17 = vadd.f32 %v514_v63, %v507_v25  ;;  %v604_v7 = vmul.f32 %v534_v14, %v534_v14 }
  0xf5   : > { %v293_v51 = vsub.f32 %v1278_v8, %v285_v15  ;;  %v529_v38 = vsel %vm314_vm4, %v526_v3, %v528_v30  ;;  %vm684_vm4 = vcmask 1040384   ;;  %v676_v30 = vld [vmem:[#allocation4] sm:$0xff] }
  0xf6   : > { %v482_v41 = vpop.permute.xlu0 %481  ;;  %v535_v42 = vadd.f32 %v529_v38, %v521_v17 }
  0xf7   : > { %v484_v39 = vpop.permute.xlu1 %483  ;;  %v308_v53 = vadd.f32 %v302_v49, %v293_v51 }
  0xf8   : > { %v497_v18 = vsel %vm284_vm5, %v482_v41, %v484_v39 }
  0xf9   : > { %v505_v22 = vsub.f32 %v1284_v12, %v497_v18  ;;  %v323_v61 = vadd.f32 %v315_v32, %v308_v53  ;;  %v605_v18 = vmul.f32 %v535_v42, %v535_v42 }
  0xfb   : > { %v519_v54 = vadd.f32 %v513_v40, %v505_v22  ;;  %v394_v4 = vmul.f32 %v323_v61, %v323_v61 }
  0xfd   : > { %v533_v12 = vadd.f32 %v525_v55, %v519_v54 }
  0xff   : > { %v603_v20 = vmul.f32 %v533_v12, %v533_v12 }
 0x145   : > { %v422_v8 = vpop.permute.xlu1 %421  ;;  %v420_v62 = vpop.permute.xlu0 %419 }
 0x146   : > { %v431_v1 = vsel %vm284_vm5, %v420_v62, %v422_v8 }
 0x147   : > { %v437_v24 = vadd.f32 %v431_v1, %v394_v4 }
 0x149   : > { %vm442_vm8 = vcmp.eq.f32.partialorder %v437_v24, inf  ;;  %v445_v58 = vand.u32 2147483648, %v437_v24  ;;  %vm444_vm10 = vcmp.eq.f32.partialorder %v437_v24, 0.0 }
 0x14e   : > { %v631_v5 = vpop.permute.xlu1 %630  ;;  %v629_v11 = vpop.permute.xlu0 %628 }
 0x14f   : > { %v640_v16 = vsel %vm284_vm5, %v629_v11, %v631_v5 }
 0x150   : > { %v646_v19 = vadd.f32 %v640_v16, %v603_v20 }
 0x152   : > { %932 = vrsqrt.f32 %v646_v19  ;;  %v426_v26 = vpop.permute.xlu1 %425  ;;  %v424_v9 = vpop.permute.xlu0 %423  ;;  %vm651_vm7 = vcmp.eq.f32.partialorder %v646_v19, inf  ;;  %v654_v54 = vand.u32 2147483648, %v646_v19  ;;  %vm653_vm9 = vcmp.eq.f32.partialorder %v646_v19, 0.0 }
 0x153   : > { %v432_v31 = vsel %vm284_vm5, %v424_v9, %v426_v26  ;;  %934 = vrsqrt.f32 %v437_v24 }
 0x154   : > { %v438_v43 = vadd.f32 %v432_v31, %v395_v6 }
 0x156   : > { %v430_v34 = vpop.permute.xlu1 %429  ;;  %v428_v36 = vpop.permute.xlu0 %427  ;;  %936 = vrsqrt.f32 %v438_v43  ;;  %vm449_vm11 = vcmp.eq.f32.partialorder %v438_v43, inf  ;;  %v452_v63 = vand.u32 2147483648, %v438_v43  ;;  %vm451_vm13 = vcmp.eq.f32.partialorder %v438_v43, 0.0 }
 0x157   : > { %v433_v37 = vsel %vm284_vm5, %v428_v36, %v430_v34 }
 0x158   : > { %v439_v10 = vadd.f32 %v433_v37, %v396_v35 }
 0x15a   : > { %v635_v39 = vpop.permute.xlu1 %634  ;;  %v633_v41 = vpop.permute.xlu0 %632  ;;  %938 = vrsqrt.f32 %v439_v10  ;;  %vm456_vm15 = vcmp.eq.f32.partialorder %v439_v10, inf  ;;  %v459_v11 = vand.u32 2147483648, %v439_v10  ;;  %vm458_vm2 = vcmp.eq.f32.partialorder %v439_v10, 0.0 }
 0x15b   : > { %v641_v44 = vsel %vm284_vm5, %v633_v41, %v635_v39 }
 0x15c   : > { %v647_v45 = vadd.f32 %v641_v44, %v604_v7 }
 0x15e   : > { %940 = vrsqrt.f32 %v647_v45  ;;  %v639_v15 = vpop.permute.xlu1 %638  ;;  %v637_v48 = vpop.permute.xlu0 %636  ;;  %vm658_vm12 = vcmp.eq.f32.partialorder %v647_v45, inf  ;;  %v661_v47 = vand.u32 2147483648, %v647_v45  ;;  %vm660_vm14 = vcmp.eq.f32.partialorder %v647_v45, 0.0 }
 0x15f   : > { %v933_v49 = vpop.eup %932  ;;  %v642_v51 = vsel %vm284_vm5, %v637_v48, %v639_v15 }
 0x160   : > { %v648_v40 = vadd.f32 %v642_v51, %v605_v18  ;;  %v935_v22 = vpop.eup %934  ;;  %v650_v27 = vmul.f32 %v933_v49, %v646_v19 }
 0x161   : > { %v441_v25 = vmul.f32 %v935_v22, %v437_v24 }
 0x162   : > { %942 = vrsqrt.f32 %v648_v40  ;;  %v652_v53 = vsel %vm651_vm7, %v646_v19, %v650_v27  ;;  %vm665_vm1 = vcmp.eq.f32.partialorder %v648_v40, inf  ;;  %v668_v13 = vand.u32 2147483648, %v648_v40 }
 0x163   : > { %v937_v52 = vpop.eup %936  ;;  %v443_v32 = vsel %vm442_vm8, %v437_v24, %v441_v25  ;;  %v655_v59 = vsel %vm653_vm9, %v654_v54, %v652_v53  ;;  %vm667_vm3 = vcmp.eq.f32.partialorder %v648_v40, 0.0 }
 0x164   : > { %v448_v55 = vmul.f32 %v937_v52, %v438_v43  ;;  %v446_v8 = vsel %vm444_vm10, %v445_v58, %v443_v32 }
 0x165   : > { %v670_v12 = vsub.f32 %v446_v8, %v655_v59 }
 0x166   : > { %v450_v61 = vsel %vm449_vm11, %v438_v43, %v448_v55  ;;  %v677_v43 = vld [vmem:[#allocation4 + $0x8] sm:$0xff] }
 0x167   : > { %v939_v57 = vpop.eup %938  ;;  %v453_v1 = vsel %vm451_vm13, %v452_v63, %v450_v61  ;;  %v673_v4 = vand.u32 2147483647, %v670_v12 }
 0x168   : > { %v455_v50 = vmul.f32 %v939_v57, %v439_v10 }
 0x169   : > { %v685_v24 = vrot.slane %v673_v4, 7 }
 0x16a   : > { %v457_v5 = vsel %vm456_vm15, %v439_v10, %v455_v50 }
 0x16b   : > { %v941_v60 = vpop.eup %940  ;;  %v460_v21 = vsel %vm458_vm2, %v459_v11, %v457_v5 }
 0x16c   : > { %v657_v62 = vmul.f32 %v941_v60, %v647_v45 }
 0x16e   : > { %v659_v0 = vsel %vm658_vm12, %v647_v45, %v657_v62 }
 0x16f   : > { %v943_v56 = vpop.eup %942  ;;  %v662_v2 = vsel %vm660_vm14, %v661_v47, %v659_v0 }
 0x170   : > { %v671_v3 = vsub.f32 %v453_v1, %v662_v2  ;;  %v664_v20 = vmul.f32 %v943_v56, %v648_v40 }
 0x172   : > { %v674_v46 = vand.u32 2147483647, %v671_v3  ;;  %v666_v16 = vsel %vm665_vm1, %v648_v40, %v664_v20 }
 0x173   : > { %v669_v23 = vsel %vm667_vm3, %v668_v13, %v666_v16 }
 0x174   : > { %v686_v19 = vrot.slane %v674_v46, 7  ;;  %v672_v26 = vsub.f32 %v460_v21, %v669_v23 }
 0x176   : > { %v687_v6 = vsel %vm684_vm4, %v685_v24, %v686_v19  ;;  %v675_v9 = vand.u32 2147483647, %v672_v26 }
 0x177   : > { %690 = vrot.lane.b32.xlu0 %v687_v6, %s1092_s19 }
 0x178   : > { %v688_v28 = vrot.slane %v675_v9, 7 }
 0x17a   : > { %v689_v29 = vsel %vm684_vm4, %v686_v19, %v688_v28 }
 0x17b   : > { %692 = vrot.lane.b32.xlu1 %v689_v29, %s1092_s19 }
 0x1e9   : > { %v691_v31 = vpop.permute.xlu0 %690 }
 0x1ea   : > { %v696_v33 = vadd.f32 %v691_v31, %v676_v30 }
 0x1ec   : > { %698 = vst.msk [vmem:[#allocation4] sm:$0xff] %vm226_vm0, %v696_v33 }
 0x1ed   : > { %v693_v34 = vpop.permute.xlu1 %692 }
 0x1ee   : > { %v697_v35 = vadd.f32 %v693_v34, %v677_v43 }
 0x1f0   : > { %699 = vst.msk [vmem:[#allocation4 + $0x8] sm:$0xff] %vm226_vm0, %v697_v35 }
 0x1f3   : > { %v703_v36 = vld [vmem:[#allocation4] sm:$0xff] }
 0x1f4   : > { %v705_v17 = vsel %vm226_vm0, %v703_v36, 0.0 }
 0x1f7   : > { %v704_v14 = vld [vmem:[#allocation4 + $0x8] sm:$0xff] }
 0x1f8   : > { %v706_v37 = vsel %vm226_vm0, %v704_v14, 0.0 }
 0x1f9   : > { %v707_v38 = vadd.f32 %v706_v37, %v705_v17 }
 0x1fb   : > { %708 = vadd.xlane.f32.xlu0 %v707_v38 }
 0x284   : > { %v709_v10 = vpop.xlane.xlu0 %708 }
 0x285   : > { %v710_v39 = vrot.slane %v709_v10, 4 }
 0x287   : > { %v711_v7 = vadd.f32 %v710_v39, %v709_v10 }
 0x289   : > { %v712_v41 = vrot.slane %v711_v7, 2 }
 0x28b   : > { %v713_v42 = vadd.f32 %v712_v41, %v711_v7 }
 0x28d   : > { %v714_v44 = vrot.slane %v713_v42, 1 }
 0x28f   : > { %v715_v45 = vadd.f32 %v714_v44, %v713_v42 }
 0x291   : > { %857 = vpush %v715_v45 }
 0x2c2   : > { %s858_s15 = spop %857 }
 0x2c3   : > { %s717_s16 = smul.f32 0.001953125, %s858_s15 }
 0x2c5   : > { %v718_v15 = vstv %s717_s16 }
 0x2c6   : > { %719 = vst [vmem:[%s219_s3] sm:$0xff] %v718_v15 }
 0x2c7   : > { %1013 = shalt.err (!%p1010_p7)
}
 0x2c8   : > { %s1014_s18 = scalar_lea.hbm %s1458_s27, 128  ;;  %s1018_s19 = scalar_lea.hbm %s1502_s2, 256 }
 0x2c9   : > { %p1015_p10 = scmp.ne.s32.totalorder %s1458_s27, %s1014_s18  ;;  %p1019_p3 = scmp.lt.s32.totalorder %s1458_s27, %s1502_s2 }
 0x2ca   : > { %p1020_p8 = scmp.lt.s32.totalorder %s1018_s19, %s1014_s18 }
 0x2cb   : > { %p1016_p1 = pnand %p1015_p10, %p1161_p9 }
 0x2cc   : > { %p1021_p0 = por %p1020_p8, %p1019_p3 }
 0x2cd   : > { %p1017_p13 = pneg %p1016_p1 }
 0x2cf   : > { %p1022_p2 = pnand %p1021_p0, %p1017_p13 }
 0x2d1   : > { %1025 = shalt.err (!%p1022_p2)
}
 0x2d2   : > { %863 = dma.vmem_to_hbm [thread:$0]  (%p1161_p9), %s735_s7, 128, %s1458_s27, %s721_s26  }
 0x2d3 PF: > { %s746_s3 = sand.u32 1, %s1064_s9   ;;  %p873_p5 = pnand %p840_p12, %p1168_p11 }
 0x2d4   : > { %s747_s8 = scalar_lea.sflag [#allocation7], %s746_s3 }
 0x2d5   : > { %p874_p6 = pneg %p873_p5 }
 0x2d7   : > { %1059 = dma.done.wait (%p874_p6), %s747_s8, 128  }
 0x2d8   : > { %1061 = vsyncadd (%p874_p6), %s747_s8, 4294967168  ;;  %s21_s14 = sadd.s32 1, %s1084_s14   ;;  %s1509_s9 = smov %s1068_s10 }
 0x2d9   : > { %p18_p4 = scmp.ge.s32.totalorder %s21_s14, 4   ;;  %s1510_s10 = smov %s1072_s11 }
 0x2da   : > { %s1511_s11 = smov %s1166_s23  ;;  %s1512_s12 = smov %s1080_s13 }
 0x2db   : > { %s1513_s13 = smov %s1515_s17  ;;  %20 = sbr.rel (!%p18_p4) target bundleno = 8 (0x8), region = 94 }
 0x2e0   :  { %752 = vsyncpa [#allocation6], 1 }
 0x2e1   :  { %754 = vsyncpa [#allocation6 + $0x1], 1 }
 0x2e2   :  { %755 = vsyncpa [#allocation9], 1 }
 0x2e3   :  { %757 = vsyncpa [#allocation9 + $0x1], 1 }
 0x2e4   :  { %758 = vsyncpa [#allocation7], 1 }
 0x2e5   :  { %760 = vsyncpa [#allocation7 + $0x1], 1 }

</bundles_post_ra>
